<compile_context>
chip_gen: v7x
topology: tpu7x:2x2x1
jax: 0.10.0
libtpu: 0.0.40
codegen_flags: <defaults>
</compile_context>

<pallas_src>
import jax
import jax.numpy as jnp
from jax.experimental import pallas as pl
from jax.experimental.pallas import tpu as pltpu


# ----------------------------- Pallas kernel ------------------------------ #

def _conv1x1_kernel(x_ref, w_ref, b_ref, o_ref):
    # x_ref: (1, C, t_hw)   w_ref: (Cout, C)   b_ref: (Cout, 1)
    # o_ref: (1, Cout, t_hw)
    acc = jnp.dot(w_ref[...], x_ref[0], preferred_element_type=jnp.float32)
    o_ref[0] = (acc + b_ref[...]).astype(o_ref.dtype)


def _choose_spatial_tile(hw, c_in, c_out, itemsize, budget_bytes=20 * 2**20):
    """Largest spatial tile that (a) divides HW, (b) is lane-dense (multiple of
    128) or the full HW, and (c) keeps double-buffered in+out under budget."""
    per_col = 2 * (c_in + c_out) * itemsize     # dbl-buffered input + output col
    cap = max(128, budget_bytes // per_col)
    if hw <= cap:
        return hw
    best = 0
    t = 128
    while t <= cap:
        if hw % t == 0:
            best = t
        t += 128
    return best if best > 0 else hw             # fallback: single full block


def conv1x1_nchw(x, w, b):
    """1x1 conv, stride 1, no padding, NCHW in/out, via Pallas.

    x: (N, C, H, W)    w: (Cout, C, 1, 1)    b: (Cout,)
    """
    N, C, H, W = x.shape
    Cout = w.shape[0]
    HW = H * W

    x3 = x.reshape(N, C, HW)                     # free reshape (NCHW contiguous)
    w2 = w.reshape(Cout, C).astype(x.dtype)      # matmul in activation dtype
    b2 = b.reshape(Cout, 1).astype(jnp.float32)  # bias added in f32

    itemsize = jnp.dtype(x.dtype).itemsize
    t_hw = _choose_spatial_tile(HW, C, Cout, itemsize)
    grid = (N, HW // t_hw)

    # Explicit scoped-VMEM budget: double-buffered x/out blocks + resident
    # weight/bias, with headroom.  Clamped to stay within v7x's 64 MiB VMEM.
    need = ((2 * C * t_hw + 2 * Cout * t_hw + 2 * Cout * C) * itemsize
            + 2 * Cout * 4 + (2 << 20))
    vmem_limit = int(min(max(2 * need, 32 * 2**20), 64 * 2**20))

    out3 = pl.pallas_call(
        _conv1x1_kernel,
        out_shape=jax.ShapeDtypeStruct((N, Cout, HW), x.dtype),
        grid_spec=pltpu.PrefetchScalarGridSpec(
            num_scalar_prefetch=0,
            grid=grid,
            in_specs=[
                pl.BlockSpec((1, C, t_hw), lambda n, j: (n, 0, j)),  # activations
                pl.BlockSpec((Cout, C), lambda n, j: (0, 0)),        # weight (resident)
                pl.BlockSpec((Cout, 1), lambda n, j: (0, 0)),        # bias (resident)
            ],
            out_specs=pl.BlockSpec((1, Cout, t_hw), lambda n, j: (n, 0, j)),
        ),
        compiler_params=pltpu.CompilerParams(
            dimension_semantics=("parallel", "parallel"),
            vmem_limit_bytes=vmem_limit),
    )(x3, w2, b2)

    return out3.reshape(N, Cout, H, W)


# --------------------------- YOLOv3Head wrapper ---------------------------- #

def _de_sigmoid(x, eps=1e-07):
    x = jnp.clip(x, eps, 1.0 / eps)
    x = jnp.clip(1.0 / x - 1.0, eps, 1.0 / eps)
    return -jnp.log(x)


class YOLOv3HeadPallas:
    def __init__(self,
                 in_channels=(1024, 512, 256),
                 anchors=((10, 13), (16, 30), (33, 23), (30, 61), (62, 45),
                          (59, 119), (116, 90), (156, 198), (373, 326)),
                 anchor_masks=((6, 7, 8), (3, 4, 5), (0, 1, 2)),
                 num_classes=80,
                 iou_aware=False,
                 iou_aware_factor=0.4,
                 key=None):
        assert len(in_channels) > 0
        self.in_channels = list(in_channels)
        self.num_classes = num_classes
        self.iou_aware = iou_aware
        self.iou_aware_factor = iou_aware_factor
        self._parse_anchor(anchors, anchor_masks)

        if key is None:
            key = jax.random.PRNGKey(0)
        self.weights = []
        self.biases = []
        for i in range(len(self.anchors)):
            na = len(self.anchors[i])
            if self.iou_aware:
                num_filters = na * (self.num_classes + 6)
            else:
                num_filters = na * (self.num_classes + 5)
            key, wk, bk = jax.random.split(key, 3)
            # deterministic synthetic init (Conv2d 1x1: (Cout, Cin, 1, 1))
            w = 0.02 * jax.random.normal(
                wk, (num_filters, self.in_channels[i], 1, 1), jnp.float32)
            b = 0.02 * jax.random.normal(bk, (num_filters,), jnp.float32)
            self.weights.append(w)
            self.biases.append(b)

    def _parse_anchor(self, anchors, anchor_masks):
        self.anchors = [[list(anchors[i]) for i in mask] for mask in anchor_masks]
        self.mask_anchors = []
        for masks in anchor_masks:
            self.mask_anchors.append([])
            for m in masks:
                assert m < len(anchors)
                self.mask_anchors[-1].extend(anchors[m])

    def __call__(self, feats):
        assert len(feats) == len(self.anchors)
        yolo_outputs = []
        for feat, w, b in zip(feats, self.weights, self.biases):
            yolo_outputs.append(conv1x1_nchw(feat, w, b))

        if not self.iou_aware:
            return yolo_outputs

        # iou_aware post-processing (elementwise glue, plain JAX).
        y = []
        for i, out in enumerate(yolo_outputs):
            na = len(self.anchors[i])
            ioup, x = out[:, 0:na, :, :], out[:, na:, :, :]
            b_, c, h, w_ = x.shape
            no = c // na
            x = x.reshape(b_, na, no, h * w_)
            ioup = ioup.reshape(b_, na, 1, h * w_)
            obj = x[:, :, 4:5, :]
            ioup = jax.nn.sigmoid(ioup)
            obj = jax.nn.sigmoid(obj)
            obj_t = obj ** (1 - self.iou_aware_factor) * ioup ** self.iou_aware_factor
            obj_t = _de_sigmoid(obj_t)
            loc_t = x[:, :, :4, :]
            cls_t = x[:, :, 5:, :]
            y_t = jnp.concatenate([loc_t, obj_t, cls_t], axis=2)
            y.append(y_t.reshape(b_, c, h, w_))
        return y


# ---------------------------------- main ----------------------------------- #

if __name__ == "__main__":
    key = jax.random.PRNGKey(0)

    # Small synthetic config (3 pyramid levels, 3 anchors each).
    batch = 2
    num_classes = 4                       # num_filters = 3 * (4 + 5) = 27
    in_channels = [64, 48, 32]
    spatial = [8, 16, 32]                 # strides 32/16/8 style pyramid

    head = YOLOv3HeadPallas(in_channels=in_channels,
                            num_classes=num_classes,
                            key=jax.random.PRNGKey(42))

    feats = []
    for c, s in zip(in_channels, spatial):
        key, sub = jax.random.split(key)
        feats.append(jax.random.normal(sub, (batch, c, s, s), jnp.float32))

    outs = head(feats)
    outs = [jax.block_until_ready(o) for o in outs]

    # Verify against a plain-JAX 1x1-conv reference.
    ok = True
    for feat, w, b, out in zip(feats, head.weights, head.biases, outs):
        ref = jnp.einsum("nchw,oc->nohw", feat, w.reshape(w.shape[0], w.shape[1]))
        ref = ref + b[None, :, None, None]
        ok = ok and bool(jnp.allclose(out, ref, atol=1e-4, rtol=1e-4))
        assert out.shape == (feat.shape[0],
                             len(head.anchors[0]) * (num_classes + 5),
                             feat.shape[2], feat.shape[3])

    if ok:
        print("KERNEL_OK")
    else:
        print("KERNEL_MISMATCH")
</pallas_src>

<mosaic_0001>
module attributes {stable_mosaic.version = 11 : i64} {
  func.func @_conv1x1_kernel(%arg0: i32, %arg1: i32, %arg2: memref<1x64x64xf32, #tpu.memory_space<vmem>>, %arg3: memref<27x64xf32, #tpu.memory_space<vmem>>, %arg4: memref<27x1xf32, #tpu.memory_space<vmem>>, %arg5: memref<1x27x64xf32, #tpu.memory_space<vmem>>) attributes {dimension_semantics = [#tpu.dimension_semantics<parallel>, #tpu.dimension_semantics<parallel>], iteration_bounds = array<i64: 2, 1>, scalar_prefetch = 0 : i64, scratch_operands = 0 : i64, tpu.core_type = #tpu.core_type<tc>, window_params = [{transform_indices = @transform_0, window_bounds = array<i64: 1, 64, 64>}, {pipeline_mode = #tpu.pipeline_mode<synchronous>, transform_indices = @transform_1, window_bounds = array<i64: 27, 64>}, {pipeline_mode = #tpu.pipeline_mode<synchronous>, transform_indices = @transform_2, window_bounds = array<i64: 27, 1>}, {transform_indices = @transform_3, window_bounds = array<i64: 1, 27, 64>}]} {
    %c0 = arith.constant 0 : index
    %c0_0 = arith.constant 0 : index
    %0 = vector.load %arg3[%c0, %c0_0] : memref<27x64xf32, #tpu.memory_space<vmem>>, vector<27x64xf32>
    %c0_1 = arith.constant 0 : index
    %c0_2 = arith.constant 0 : index
    %c0_3 = arith.constant 0 : index
    %1 = vector.load %arg2[%c0_1, %c0_2, %c0_3] : memref<1x64x64xf32, #tpu.memory_space<vmem>>, vector<1x64x64xf32>
    %2 = vector.shape_cast %1 : vector<1x64x64xf32> to vector<64x64xf32>
    %cst = arith.constant dense<0.000000e+00> : vector<27x64xf32>
    %3 = tpu.matmul %0, %2, %cst {dimension_numbers = #tpu.dot_dimension_numbers<[1], [0], [0], [1], [0, 0, 1, 1], [], []>} : vector<27x64xf32>, vector<64x64xf32>, vector<27x64xf32> -> vector<27x64xf32>
    %c0_4 = arith.constant 0 : index
    %c0_5 = arith.constant 0 : index
    %4 = vector.load %arg4[%c0_4, %c0_5] : memref<27x1xf32, #tpu.memory_space<vmem>>, vector<27x1xf32>
    %5 = vector.broadcast %4 : vector<27x1xf32> to vector<27x64xf32>
    %6 = arith.addf %3, %5 : vector<27x64xf32>
    %c0_6 = arith.constant 0 : index
    %c0_7 = arith.constant 0 : index
    %c0_8 = arith.constant 0 : index
    %7 = vector.load %arg5[%c0_6, %c0_7, %c0_8] : memref<1x27x64xf32, #tpu.memory_space<vmem>>, vector<1x27x64xf32>
    %8 = vector.shape_cast %7 : vector<1x27x64xf32> to vector<27x64xf32>
    %9 = vector.shape_cast %6 : vector<27x64xf32> to vector<1x27x64xf32>
    tpu.vector_store %arg5[%c0_6, %c0_7, %c0_8], %9 {strides = array<i32>} : memref<1x27x64xf32, #tpu.memory_space<vmem>>, vector<1x27x64xf32>,
    return
  }
  func.func @transform_0(%arg0: i32, %arg1: i32) -> (i32, i32, i32) {
    %c0_i32 = arith.constant 0 : i32
    %c0_i32_0 = arith.constant 0 : i32
    return %arg0, %c0_i32, %arg1 : i32, i32, i32
  }
  func.func @transform_1(%arg0: i32, %arg1: i32) -> (i32, i32) {
    %c0_i32 = arith.constant 0 : i32
    %c0_i32_0 = arith.constant 0 : i32
    %c0_i32_1 = arith.constant 0 : i32
    return %c0_i32, %c0_i32_0 : i32, i32
  }
  func.func @transform_2(%arg0: i32, %arg1: i32) -> (i32, i32) {
    %c0_i32 = arith.constant 0 : i32
    %c0_i32_0 = arith.constant 0 : i32
    %c0_i32_1 = arith.constant 0 : i32
    return %c0_i32, %c0_i32_0 : i32, i32
  }
  func.func @transform_3(%arg0: i32, %arg1: i32) -> (i32, i32, i32) {
    %c0_i32 = arith.constant 0 : i32
    %c0_i32_0 = arith.constant 0 : i32
    return %arg0, %c0_i32, %arg1 : i32, i32, i32
  }
}

</mosaic_0001>

<bundles_post_ra>
// kernel: tpu_custom_call.1
= control target key start
LH: loop header
LB: loop body
LE: loop exit
PB: predicated region body
PF: predicated region fallthrough
CT: control target
= control target key end

     0   :  { %8 = vsyncpa [#allocation3], 0  ;;  %s842_s0 = inlined_call_operand.hbm [shape: f32[2,64,64], index: 0, kind: input, shape index: {}]   ;;  %s843_s1 = inlined_call_operand.vmem [shape: f32[27,64], index: 1, kind: input, shape index: {}]   ;;  %s844_s2 = inlined_call_operand.vmem [shape: f32[27,1], index: 2, kind: input, shape index: {}]   ;;  %s845_s3 = inlined_call_operand.vmem [shape: f32[2,27,64], index: 3, kind: output, shape index: {}]  }
   0x1   :  { %10 = vsyncpa [#allocation3 + $0x1], 0  ;;  %s687_s12 = smov 0   ;;  %s689_s13 = smov 0  }
   0x2   :  { %s691_s14 = smov 0   ;;  %s693_s15 = smov 0  }
   0x3   :  { %s695_s16 = smov 0   ;;  %s697_s17 = smov 0  }
   0x4 LB: > { %s444_s18 = sadd.s32 4294967295, %s661_s17   ;;  %s28_s19 = sadd.s32 1, %s657_s16  ;;  %s661_s17 = sphi %s697_s17, %s16_s17   ;;  %s657_s16 = sphi %s695_s16, %s853_s16   ;;  %s653_s15 = sphi %s693_s15, %s852_s15   ;;  %s649_s14 = sphi %s691_s14, %s851_s14   ;;  %s645_s13 = sphi %s689_s13, %s850_s13   ;;  %s641_s12 = sphi %s687_s12, %s849_s12  }
   0x5   : > { %p30_p0 = scmp.ge.s32.totalorder %s28_s19, 2  ;;  %s37_s20 = sadd.s32 1, %s649_s14 }
   0x6   : > { %p44_p1 = scmp.ne.s32.totalorder %s649_s14, %s645_s13  ;;  %p45_p2 = scmp.eq.s32.totalorder %s661_s17, 0 }
   0x7   : > { %s855_s19 = smov (%p30_p0, %s28_s19), 0  ;;  %p50_p4 = scmp.ne.s32.totalorder %s645_s13, %s641_s12 }
   0x8   : > { %p723_p3 = por %p45_p2, %p44_p1  ;;  %s32_s22 = ssub.s32 %s657_s16, %s855_s19 }
   0x9   : > { %p51_p5 = scmp.eq.s32.totalorder %s444_s18, 0  ;;  %p35_p6 = scmp.eq.s32.totalorder %s32_s22, 0 }
   0xa   : > { %p527_p8 = scmp.lt.s32.totalorder %s661_s17, 2  ;;  %s150_s25 = sand.u32 1, %s649_s14  }
   0xb   : > { %p730_p7 = por %p51_p5, %p50_p4  ;;  %s461_s26 = sshll.u32 %s657_s16, 10 }
   0xc   : > { %s736_s24 = scalar_select %p35_p6, %s649_s14, %s37_s20  }
   0xd   : > { %s448_s27 = sshll.u32 %s150_s25, 6  ;;  %s743_s30 = scalar_lea.hbm %s842_s0, %s461_s26 }
   0xe   : > { %s154_s4 = scalar_lea.vmem [#allocation2], %s448_s27  ;;  %p747_p9 = pnand %p527_p8, %p723_p3 }
   0xf   : > { %s162_s5 = sshll.u32 %s154_s4, 4  ;;  %s753_s7 = scalar_lea.sflag [#allocation3], %s150_s25  ;;  %s751_s5 = int_to_ptr.vmem [resolvable:$true] %s162_s5 }
  0x10   : > { %s581_s8 = scalar_lea.hbm %s743_s30, 1024  ;;  %p583_p11 = pneg %p747_p9 }
  0x11   : > { %p582_p10 = scmp.ne.s32.totalorder %s743_s30, %s581_s8  ;;  %s586_s11 = scalar_lea.hbm %s842_s0, 2048 }
  0x12   : > { %p587_p0 = scmp.lt.u32.totalorder %s743_s30, %s842_s0  ;;  %p588_p1 = scmp.lt.u32.totalorder %s586_s11, %s581_s8 }
  0x13   : > { %p584_p12 = pnand %p583_p11, %p582_p10  ;;  %p590_p3 = scmp.lt.u32.totalorder %s581_s8, %s743_s30 }
  0x14   : > { %p589_p2 = por %p588_p1, %p587_p0 }
  0x15   : > { %p585_p13 = pneg %p584_p12 }
  0x16   : > { %p591_p4 = por %p590_p3, %p589_p2 }
  0x18   : > { %p592_p5 = pnand %p591_p4, %p585_p13 }
  0x1a   : > { %595 = shalt.err (!%p592_p5)
}
  0x1b   : > { %s596_s20 = scalar_lea.vmem %s751_s5, 1024  ;;  %s663_s21 = smov [#allocation2]  }
  0x1c   : > { %p597_p6 = scmp.ne.s32.totalorder %s751_s5, %s596_s20  ;;  %s601_s22 = sshll.u32 %s663_s21, 4  ;;  %s602_s22 = int_to_ptr.vmem [resolvable:$false] %s601_s22 }
  0x1d   : > { %s603_s25 = scalar_lea.vmem %s602_s22, 2048  ;;  %p604_p12 = scmp.lt.s32.totalorder %s751_s5, %s602_s22 }
  0x1e   : > { %p599_p8 = pnand %p597_p6, %p583_p11  ;;  %p605_p0 = scmp.lt.s32.totalorder %s603_s25, %s596_s20 }
  0x20   : > { %p600_p10 = pneg %p599_p8  ;;  %p606_p1 = por %p605_p0, %p604_p12 }
  0x22   : > { %p607_p2 = pnand %p606_p1, %p600_p10 }
  0x24   : > { %610 = shalt.err (!%p607_p2)
}
  0x25   : > { %s664_s26 = smov 128   ;;  %s665_s27 = smov 8  }
  0x26   : > { %526 = dma.hbm_to_vmem [thread:$0]  (!%p747_p9), %s743_s30, 1024, %s751_s5, %s753_s7, %s664_s26, %s664_s26, %s665_s27  }
  0x27   : > { %p451_p11 = scmp.ge.s32.totalorder %s661_s17, 1  ;;  %p170_p13 = scmp.lt.s32.totalorder %s661_s17, 3 }
  0x29   : > { %p171_p3 = pnand %p451_p11, %p170_p13 }
  0x2a   : > { %s176_s28 = sand.u32 (!%p171_p3), 1, %s645_s13  }
  0x2b   : > { %174 = sbr.rel (%p171_p3) target bundleno = 287 (0x11f), region = 32  ;;  %s452_s29 = sshll.u32 (!%p171_p3), %s176_s28, 6 }
  0x2c   : > { %s177_s4 = scalar_lea.sflag (!%p171_p3), [#allocation3], %s176_s28  ;;  %s180_s8 = scalar_lea.vmem (!%p171_p3), [#allocation2], %s452_s29 }
  0x32   : > { %636 = dma.done.wait (%p730_p7), %s177_s4, 1024  }
  0x33   : > { %638 = vsyncadd (%p730_p7), %s177_s4, 4294966272  ;;  %v666_v0 = vmov 0   ;;  %v218_v1 = vld [vmem:[%s180_s8] sm:$0xff]  ;;  %v219_v2 = vld [vmem:[%s180_s8 + $0x8] sm:$0xff]  ;;  %vm250_vm0 = vcmask 523264   ;;  %p206_p7 = scmp.lt.s32.totalorder %s653_s15, 1 }
  0x34   : > { %580 = vset.pattern.permute.xlu1 %v666_v0  ;;  %579 = vset.pattern.permute.xlu0 %v666_v0  ;;  %v220_v3 = vld [vmem:[%s180_s8 + $0x10] sm:$0xff]  ;;  %v497_v4 = vpack.c.bf16 %v219_v2, %v218_v1  ;;  %v221_v5 = vld [vmem:[%s180_s8 + $0x18] sm:$0xff]  ;;  %v222_v7 = vld [vmem:[%s180_s8 + $0x20] sm:$0xff]  ;;  %vm351_vm1 = vcmask 518144  }
  0x35   : > { %v501_v6 = vpack.c.bf16 %v221_v5, %v220_v3  ;;  %v223_v8 = vld [vmem:[%s180_s8 + $0x28] sm:$0xff]  ;;  %v214_v9 = vld [vmem:[%s843_s1] sm:$0xff]  ;;  %v216_v10 = vld [vmem:[%s843_s1 + $0x10] sm:$0xff]  ;;  %s857_s15 = smov (!%p206_p7, %s653_s15), 1 }
  0x36   : > { %498 = vmatprep.subr.bf16.mxu0 %v497_v4  ;;  %513 = vmatprep.subr.bf16.mxu1 %v497_v4  ;;  %v228_v11 = vld [vmem:[%s844_s2 + $0x10] sm:$0xff]  ;;  %v226_v12 = vld [vmem:[%s844_s2] sm:$0xff]  ;;  %v505_v13 = vpack.c.bf16 %v223_v8, %v222_v7  ;;  %v225_v15 = vld [vmem:[%s180_s8 + $0x38] sm:$0xff]  ;;  %s462_s28 = sshll.u32 %s857_s15, 5 }
  0x37   : > { %500 = vmatpush3.bf16.msra.mxu0 %v497_v4  ;;  %517 = vmatpush3.bf16.msra.mxu1 %v497_v4  ;;  %v224_v14 = vld [vmem:[%s180_s8 + $0x30] sm:$0xff]  ;;  %v229_v16 = vld [vmem:[%s844_s2 + $0x18] sm:$0x7]  ;;  %v227_v17 = vld [vmem:[%s844_s2 + $0x8] sm:$0xff]  ;;  %s213_s8 = scalar_lea.vmem %s845_s3, %s462_s28 }
  0x38   : > { %502 = vmatprep.subr.bf16.mxu0 %v501_v6  ;;  %514 = vmatprep.subr.bf16.mxu1 %v501_v6  ;;  %v509_v18 = vpack.c.bf16 %v225_v15, %v224_v14  ;;  %v215_v19 = vld [vmem:[%s843_s1 + $0x8] sm:$0xff]  ;;  %v217_v20 = vld [vmem:[%s843_s1 + $0x18] sm:$0x7] }
  0x39   : > { %491 = vmatprep.mubr.msk.f32.mxu0 %vm250_vm0, %v214_v9  ;;  %494 = vmatprep.mubr.msk.f32.mxu1 %vm250_vm0, %v216_v10 }
  0x3a   : > { %242 = vperm.xlu1 %580, %v228_v11   ;;  %232 = vperm.xlu0 %579, %v226_v12  }
  0x3b   : > { %504 = vmatpush3.bf16.msra.mxu0 %v501_v6  ;;  %518 = vmatpush3.bf16.msra.mxu1 %v501_v6 }
  0x3c   : > { %506 = vmatprep.subr.bf16.mxu0 %v505_v13  ;;  %515 = vmatprep.subr.bf16.mxu1 %v505_v13 }
  0x3e   : > { %247 = vperm.xlu1 %580, %v229_v16   ;;  %237 = vperm.xlu0 %579, %v227_v17  }
  0x3f   : > { %508 = vmatpush3.bf16.msra.mxu0 %v505_v13  ;;  %519 = vmatpush3.bf16.msra.mxu1 %v505_v13 }
  0x40   : > { %510 = vmatprep.subr.bf16.mxu0 %v509_v18  ;;  %516 = vmatprep.subr.bf16.mxu1 %v509_v18 }
  0x43   : > { %512 = vmatpush3.bf16.msra.mxu0 %v509_v18  ;;  %520 = vmatpush3.bf16.msra.mxu1 %v509_v18 }
  0x46   : > { %492 = vmatmul.mubr.msk.f32.vlgmr.msra.gmra.mrb[0].mxu0 %vm250_vm0, %v215_v19  ;;  %495 = vmatmul.mubr.msk.f32.vlgmr.msra.gmra.mrb[0].mxu1 %vm250_vm0, %v217_v20 }
  0xb9   : > { %v243_v21 = vpop.permute.xlu1 %242  ;;  %v233_v22 = vpop.permute.xlu0 %232 }
  0xbd   : > { %v248_v23 = vpop.permute.xlu1 %247  ;;  %v238_v24 = vpop.permute.xlu0 %237 }
 0x119   : > { %v493_v25 = vpop.f32.mrb[0].mxu0  ;;  %v496_v26 = vpop.f32.mrb[0].mxu1 }
 0x11a   : > { %v335_v27 = vadd.f32 %v493_v25, %v238_v24  ;;  %v345_v28 = vadd.f32 %v496_v26, %v248_v23  ;;  %v329_v29 = vpop.f32.mrb[1].mxu0  ;;  %v339_v30 = vpop.f32.mrb[1].mxu1 }
 0x11b   : > { %v330_v31 = vadd.f32 %v329_v29, %v233_v22  ;;  %v340_v32 = vadd.f32 %v339_v30, %v243_v21 }
 0x11c   : > { %349 = vst.msk [vmem:[%s213_s8 + $0x8] sm:$0xff] %vm250_vm0, %v335_v27 }
 0x11d   : > { %352 = vst.msk [vmem:[%s213_s8 + $0x18] sm:$0x7] %vm351_vm1, %v345_v28 }
 0x11e   : > { %348 = vst.msk [vmem:[%s213_s8] sm:$0xff] %vm250_vm0, %v330_v31  ;;  %350 = vst.msk [vmem:[%s213_s8 + $0x10] sm:$0xff] %vm250_vm0, %v340_v32 }
 0x11f PF: > { %s16_s17 = sadd.s32 1, %s661_s17   ;;  %s849_s12 = smov %s645_s13 }
 0x120   : > { %p13_p9 = scmp.ge.s32.totalorder %s16_s17, 4   ;;  %s850_s13 = smov %s649_s14 }
 0x121   : > { %s851_s14 = smov %s736_s24  ;;  %s852_s15 = smov %s657_s16 }
 0x122   : > { %s853_s16 = smov %s855_s19  ;;  %15 = sbr.rel (!%p13_p9) target bundleno = 4 (0x4), region = 72 }
 0x129   :  { %380 = vsyncpa [#allocation3], 1 }
 0x12a   :  { %382 = vsyncpa [#allocation3 + $0x1], 1 }

</bundles_post_ra>
